<compile_context>
chip_gen: v7x
topology: tpu7x:2x2x1
jax: 0.10.0
libtpu: 0.0.40
codegen_flags: <defaults>
</compile_context>

<pallas_src>
import jax
import jax.numpy as jnp
from jax import lax
from jax.experimental import pallas as pl
from jax.experimental.pallas import tpu as pltpu

# ----------------------------- model sizes ---------------------------------
B = 2          # batch
C_IN = 4       # image channels (NCHW input)
H = W = 16     # spatial
HW = H * W
C_LAT = 8      # latent channels produced by the autoencoder
TEMB = 64      # sinusoidal time-embedding dim
T_VOICE = 8    # voice condition sequence length
D_VOICE = 32   # voice condition feature dim
D_CTX = 32     # voice embedding (cross-attn context) dim
D_H = 32       # unet hidden dim
NUM_TIMESTEPS = 1000

_BF16 = jnp.bfloat16

# ---- weight-slab row offsets (every block starts on an 8-row boundary) -----
_LANES = 64          # slab lane width == max weight column count
R_W_ENC = 0          # (C_LAT, C_IN)   encode weight, pre-transposed
R_B_ENC = 8          # (C_LAT, 1)
R_W_VOICE = 16       # (D_VOICE, D_CTX)
R_B_VOICE = 48       # (1, D_CTX)
R_W_IN = 56          # (D_H, C_LAT)    pre-transposed
R_W_T = 88           # (D_H, TEMB)     pre-transposed
R_W_Q = 120          # (D_H, D_H)      pre-transposed, 1/sqrt(D_H) folded in
R_W_KV = 152         # (D_CTX, 2*D_H)  fused [K | V] projection
R_W_O = 184          # (D_H, D_H)      pre-transposed
R_W_OUT = 216        # (C_LAT, D_H)    pre-transposed
R_W_DEC = 224        # (C_IN, C_LAT)
R_B_DEC = 232        # (C_IN, 1)
R_TOTAL = 240


def _mm_bf16(a, b):
    """MXU matmul, bf16 operands + f32 accumulation (used when K >= 16)."""
    return jnp.dot(a.astype(_BF16), b.astype(_BF16),
                   preferred_element_type=jnp.float32)


def _mm_f32(a, b):
    """MXU matmul kept in f32 (tiny K <= 8: the bf16 cast buys nothing)."""
    return jnp.dot(a, b, preferred_element_type=jnp.float32)


# ----------------------------- fused Pallas kernel --------------------------
def _ldm_fused_kernel(coeff_ref, x_ref, noise_ref, voice_ref, tembT_ref,
                      w_ref, out_ref):
    # ---- static views into the single weight slab (cheap sub-tile loads).
    w_enc_t = w_ref[R_W_ENC:R_W_ENC + C_LAT, :C_IN]            # (8, 4)
    b_enc = w_ref[R_B_ENC:R_B_ENC + C_LAT, :1]                 # (8, 1)
    w_voice = w_ref[R_W_VOICE:R_W_VOICE + D_VOICE, :D_CTX]     # (32, 32)
    b_voice = w_ref[R_B_VOICE:R_B_VOICE + 1, :D_CTX]           # (1, 32)
    w_in_t = w_ref[R_W_IN:R_W_IN + D_H, :C_LAT]                # (32, 8)
    w_t_t = w_ref[R_W_T:R_W_T + D_H, :TEMB]                    # (32, 64)
    wq_t = w_ref[R_W_Q:R_W_Q + D_H, :D_H]                      # (32, 32)
    w_kv = w_ref[R_W_KV:R_W_KV + D_CTX, :2 * D_H]              # (32, 64)
    wo_t = w_ref[R_W_O:R_W_O + D_H, :D_H]                      # (32, 32)
    w_out_t = w_ref[R_W_OUT:R_W_OUT + C_LAT, :D_H]             # (8, 32)
    w_dec_t = w_ref[R_W_DEC:R_W_DEC + C_IN, :C_LAT]            # (4, 8)
    b_dec = w_ref[R_B_DEC:R_B_DEC + C_IN, :1]                  # (4, 1)

    # ---- batch-shared projections (batch folded into the sublane axis).
    # voice encoder: per-frame linear + tanh, then fused K|V projection.
    ctx = jnp.tanh(_mm_bf16(voice_ref[...], w_voice) + b_voice)   # (B*T, D_CTX)
    kv = _mm_bf16(ctx, w_kv)                                      # (B*T, 2*D_H)
    # time-embedding projection in column form: per-batch bias == a lane slice.
    tproj = _mm_bf16(w_t_t, tembT_ref[...])                       # (D_H, B)

    outs = []
    for b in range(B):                                            # B=2, static unroll
        # ---- autoencoder.encode: 1x1 conv over channels (channel-major).
        x_b = x_ref[b * C_IN:(b + 1) * C_IN, :]                   # (C_IN, HW)
        diff = _mm_f32(w_enc_t, x_b) + b_enc                      # (C_LAT, HW)

        # ---- q_sample with per-batch scalar coefficients read from SMEM.
        a_b = coeff_ref[b, 0]                                     # sqrt_alphas_cumprod[t_b]
        s_b = coeff_ref[b, 1]                                     # sqrt(1 - a_b)
        noise_b = noise_ref[b * C_LAT:(b + 1) * C_LAT, :]         # (C_LAT, HW)
        xn = diff * a_b + noise_b * s_b                           # (C_LAT, HW)

        # ---- unet trunk: time-conditioned MLP with SiLU.
        h = _mm_f32(w_in_t, xn) + tproj[:, b:b + 1]               # (D_H, HW)
        h = h * jax.nn.sigmoid(h)                                 # SiLU

        # ---- cross-attention over the voice context.
        #      Scores laid out (T, HW): T on sublanes, HW on lanes (dense vregs).
        q_cm = _mm_bf16(wq_t, h)                                  # (D_H, HW); scale pre-folded
        k_b = kv[b * T_VOICE:(b + 1) * T_VOICE, :D_H]             # (T, D_H)
        v_b = kv[b * T_VOICE:(b + 1) * T_VOICE, D_H:]             # (T, D_H)

        s = _mm_bf16(k_b, q_cm)                                   # (T, HW)
        s = s - jnp.max(s, axis=0, keepdims=True)                 # softmax over keys
        p = jnp.exp(s)
        p = p * pl.reciprocal(jnp.sum(p, axis=0, keepdims=True), approx=True)
        # attn[d, q] = sum_k v[k, d] * p[k, q]   (K = T = 8 -> keep f32)
        attn = lax.dot_general(v_b, p,
                               dimension_numbers=(((0,), (0,)), ((), ())),
                               preferred_element_type=jnp.float32)  # (D_H, HW)

        h2 = h + _mm_bf16(wo_t, attn)                             # (D_H, HW)
        lat = xn + _mm_bf16(w_out_t, h2)                          # (C_LAT, HW)

        # ---- autoencoder.decode: 1x1 conv back to image channels.
        outs.append(_mm_f32(w_dec_t, lat) + b_dec)                # (C_IN, HW)

    # One unmasked, lane/sublane-dense (8, 256) store == flat NCHW output.
    out_ref[...] = jnp.concatenate(outs, axis=0)


# ----------------------------- glue (plain JAX) ------------------------------
def get_time_embedding(time_steps, temb_dim):
    """Sinusoidal time embedding, matching the PyTorch formula."""
    # TODO(synk): the reference forward calls get_time_embedding(x.size(0), t),
    # which mismatches its own (time_steps, temb_dim) signature; we embed the
    # per-batch integer timesteps t into a TEMB-dim vector (the sane reading).
    half = temb_dim // 2
    factor = 10000.0 ** (jnp.arange(half, dtype=jnp.float32) / float(half))
    te = time_steps[:, None].astype(jnp.float32) / factor[None, :]
    return jnp.concatenate([jnp.sin(te), jnp.cos(te)], axis=-1)


def init_params(key):
    ks = jax.random.split(key, 9)
    n = lambda k, shape, fan_in: (
        jax.random.normal(k, shape, jnp.float32) / jnp.sqrt(jnp.float32(fan_in)))

    w_enc = n(ks[0], (C_IN, C_LAT), C_IN)
    b_enc = jnp.zeros((C_LAT,), jnp.float32)
    w_voice = n(ks[1], (D_VOICE, D_CTX), D_VOICE)
    b_voice = jnp.zeros((D_CTX,), jnp.float32)
    w_in = n(ks[2], (C_LAT, D_H), C_LAT)
    w_t = n(ks[3], (TEMB, D_H), TEMB)
    wq = n(ks[4], (D_H, D_H), D_H) * (float(D_H) ** -0.5)   # attn scale folded in
    w_kv = n(ks[5], (D_CTX, 2 * D_H), D_CTX)                # fused [K | V]
    wo = n(ks[6], (D_H, D_H), D_H)
    w_out = n(ks[7], (D_H, C_LAT), D_H)
    w_dec_t = n(ks[8], (C_IN, C_LAT), C_LAT)                # decode weight (C_IN, C_LAT)
    b_dec = jnp.zeros((C_IN,), jnp.float32)

    # One pre-concatenated f32 weight slab (single ~60 KiB DMA per call).
    slab = jnp.zeros((R_TOTAL, _LANES), jnp.float32)

    def put(s, row, arr):
        r, c = arr.shape
        return s.at[row:row + r, :c].set(arr)

    slab = put(slab, R_W_ENC, w_enc.T)           # (C_LAT, C_IN)
    slab = put(slab, R_B_ENC, b_enc[:, None])    # (C_LAT, 1) column
    slab = put(slab, R_W_VOICE, w_voice)         # (D_VOICE, D_CTX)
    slab = put(slab, R_B_VOICE, b_voice[None, :])
    slab = put(slab, R_W_IN, w_in.T)             # (D_H, C_LAT)
    slab = put(slab, R_W_T, w_t.T)               # (D_H, TEMB)
    slab = put(slab, R_W_Q, wq.T)                # (D_H, D_H)
    slab = put(slab, R_W_KV, w_kv)               # (D_CTX, 2*D_H)
    slab = put(slab, R_W_O, wo.T)                # (D_H, D_H)
    slab = put(slab, R_W_OUT, w_out.T)           # (C_LAT, D_H)
    slab = put(slab, R_W_DEC, w_dec_t)           # (C_IN, C_LAT)
    slab = put(slab, R_B_DEC, b_dec[:, None])    # (C_IN, 1) column

    # Diffusion schedule, exactly as in the module:
    #   sqrt_alphas_cumprod = sqrt(1 - cumprod(betas))
    betas = jnp.linspace(1e-4, 0.02, NUM_TIMESTEPS, dtype=jnp.float32)
    return {"w_slab": slab,
            "sqrt_alphas_cumprod": jnp.sqrt(1.0 - jnp.cumprod(betas))}


@jax.jit
def latent_diffusion_forward(params, x_nchw, voice_condition, t, noise):
    """Mirrors LatentDiffusion.forward: encode -> q_sample -> voice_encoder
    -> unet(context, t_emb) -> decode.  Returns NCHW."""
    # Transposed (TEMB, B) so the per-batch t-emb bias is a column inside the kernel.
    t_emb_t = get_time_embedding(t, TEMB).T                       # (TEMB, B)

    # Lane-dense, channel-major views: flat NCHW stays flat (pure reshapes).
    x2 = x_nchw.reshape(B * C_IN, HW)                             # (8, 256)
    noise2 = noise.reshape(B * C_LAT, HW)                         # (16, 256)
    voice2 = voice_condition.reshape(B * T_VOICE, D_VOICE)        # (16, 32)

    # TODO(synk): the reference passes t_emb (a float BxD tensor) into
    # q_sample's integer indexing of sqrt_alphas_cumprod, which is ill-typed
    # in PyTorch; we index with the integer timesteps t (one scalar per batch).
    a = params["sqrt_alphas_cumprod"][t].astype(jnp.float32)      # (B,)
    # q_sample per the reference: x*a + noise*sqrt(1 - a), a = sqrt(1 - cumprod(betas))[t]
    coeffs = jnp.stack([a, jnp.sqrt(1.0 - a)], axis=1)            # (B, 2) -> SMEM

    out = pl.pallas_call(
        _ldm_fused_kernel,
        out_shape=jax.ShapeDtypeStruct((B * C_IN, HW), jnp.float32),
        in_specs=[
            pl.BlockSpec(memory_space=pltpu.MemorySpace.SMEM),    # q_sample coeffs
            pl.BlockSpec(memory_space=pltpu.MemorySpace.VMEM),    # x   (flat NCHW)
            pl.BlockSpec(memory_space=pltpu.MemorySpace.VMEM),    # noise (flat latent NCHW)
            pl.BlockSpec(memory_space=pltpu.MemorySpace.VMEM),    # voice frames
            pl.BlockSpec(memory_space=pltpu.MemorySpace.VMEM),    # t_emb (transposed)
            pl.BlockSpec(memory_space=pltpu.MemorySpace.VMEM),    # weight slab
        ],
        out_specs=pl.BlockSpec(memory_space=pltpu.MemorySpace.VMEM),
    )(coeffs, x2, noise2, voice2, t_emb_t, params["w_slab"])

    # Kernel output is flat channel-major (B*C_IN, HW): reshape == NCHW view.
    return out.reshape(B, C_IN, H, W)


# ----------------------------- main -----------------------------------------
if __name__ == "__main__":
    key = jax.random.PRNGKey(0)
    k_x, k_voice, k_t, k_noise, k_params = jax.random.split(key, 5)

    x = jax.random.normal(k_x, (B, C_IN, H, W), jnp.float32)          # NCHW
    voice = jax.random.normal(k_voice, (B, T_VOICE, D_VOICE), jnp.float32)
    t = jax.random.randint(k_t, (B,), 0, NUM_TIMESTEPS)
    noise = jax.random.normal(k_noise, (B, C_LAT, H, W), jnp.float32)  # latent NCHW

    params = init_params(k_params)
    out = latent_diffusion_forward(params, x, voice, t, noise)
    jax.block_until_ready(out)

    assert out.shape == (B, C_IN, H, W), out.shape
    assert out.dtype == jnp.float32
    assert bool(jnp.isfinite(out).all())
    print("KERNEL_OK")
</pallas_src>

<mosaic_0001>
module attributes {stable_mosaic.version = 11 : i64} {
  func.func @_ldm_fused_kernel(%arg0: memref<2x2xf32, #tpu.memory_space<smem>>, %arg1: memref<8x256xf32, #tpu.memory_space<vmem>>, %arg2: memref<16x256xf32, #tpu.memory_space<vmem>>, %arg3: memref<16x32xf32, #tpu.memory_space<vmem>>, %arg4: memref<64x2xf32, #tpu.memory_space<vmem>>, %arg5: memref<240x64xf32, #tpu.memory_space<vmem>>, %arg6: memref<8x256xf32, #tpu.memory_space<vmem>>) attributes {dimension_semantics = [], scalar_prefetch = 0 : i64, scratch_operands = 0 : i64, tpu.core_type = #tpu.core_type<tc>} {
    %c0 = arith.constant 0 : index
    %c0_0 = arith.constant 0 : index
    %0 = vector.load %arg5[%c0, %c0_0] : memref<240x64xf32, #tpu.memory_space<vmem>>, vector<8x4xf32>
    %c8 = arith.constant 8 : index
    %c0_1 = arith.constant 0 : index
    %1 = vector.load %arg5[%c8, %c0_1] : memref<240x64xf32, #tpu.memory_space<vmem>>, vector<8x1xf32>
    %c16 = arith.constant 16 : index
    %c0_2 = arith.constant 0 : index
    %2 = vector.load %arg5[%c16, %c0_2] : memref<240x64xf32, #tpu.memory_space<vmem>>, vector<32x32xf32>
    %c48 = arith.constant 48 : index
    %c0_3 = arith.constant 0 : index
    %3 = vector.load %arg5[%c48, %c0_3] : memref<240x64xf32, #tpu.memory_space<vmem>>, vector<1x32xf32>
    %c56 = arith.constant 56 : index
    %c0_4 = arith.constant 0 : index
    %4 = vector.load %arg5[%c56, %c0_4] : memref<240x64xf32, #tpu.memory_space<vmem>>, vector<32x8xf32>
    %c88 = arith.constant 88 : index
    %c0_5 = arith.constant 0 : index
    %5 = vector.load %arg5[%c88, %c0_5] : memref<240x64xf32, #tpu.memory_space<vmem>>, vector<32x64xf32>
    %c120 = arith.constant 120 : index
    %c0_6 = arith.constant 0 : index
    %6 = vector.load %arg5[%c120, %c0_6] : memref<240x64xf32, #tpu.memory_space<vmem>>, vector<32x32xf32>
    %c152 = arith.constant 152 : index
    %c0_7 = arith.constant 0 : index
    %7 = vector.load %arg5[%c152, %c0_7] : memref<240x64xf32, #tpu.memory_space<vmem>>, vector<32x64xf32>
    %c184 = arith.constant 184 : index
    %c0_8 = arith.constant 0 : index
    %8 = vector.load %arg5[%c184, %c0_8] : memref<240x64xf32, #tpu.memory_space<vmem>>, vector<32x32xf32>
    %c216 = arith.constant 216 : index
    %c0_9 = arith.constant 0 : index
    %9 = vector.load %arg5[%c216, %c0_9] : memref<240x64xf32, #tpu.memory_space<vmem>>, vector<8x32xf32>
    %c224 = arith.constant 224 : index
    %c0_10 = arith.constant 0 : index
    %10 = vector.load %arg5[%c224, %c0_10] : memref<240x64xf32, #tpu.memory_space<vmem>>, vector<4x8xf32>
    %c232 = arith.constant 232 : index
    %c0_11 = arith.constant 0 : index
    %11 = vector.load %arg5[%c232, %c0_11] : memref<240x64xf32, #tpu.memory_space<vmem>>, vector<4x1xf32>
    %c0_12 = arith.constant 0 : index
    %c0_13 = arith.constant 0 : index
    %12 = vector.load %arg3[%c0_12, %c0_13] : memref<16x32xf32, #tpu.memory_space<vmem>>, vector<16x32xf32>
    %13 = arith.truncf %12 : vector<16x32xf32> to vector<16x32xbf16>
    %14 = arith.truncf %2 : vector<32x32xf32> to vector<32x32xbf16>
    %cst = arith.constant dense<0.000000e+00> : vector<16x32xf32>
    %15 = tpu.matmul %13, %14, %cst {dimension_numbers = #tpu.dot_dimension_numbers<[1], [0], [0], [1], [0, 0, 1, 1], [], []>} : vector<16x32xbf16>, vector<32x32xbf16>, vector<16x32xf32> -> vector<16x32xf32>
    %16 = vector.broadcast %3 : vector<1x32xf32> to vector<16x32xf32>
    %17 = arith.addf %15, %16 : vector<16x32xf32>
    %18 = math.tanh %17 : vector<16x32xf32>
    %19 = arith.truncf %18 : vector<16x32xf32> to vector<16x32xbf16>
    %20 = arith.truncf %7 : vector<32x64xf32> to vector<32x64xbf16>
    %cst_14 = arith.constant dense<0.000000e+00> : vector<16x64xf32>
    %21 = tpu.matmul %19, %20, %cst_14 {dimension_numbers = #tpu.dot_dimension_numbers<[1], [0], [0], [1], [0, 0, 1, 1], [], []>} : vector<16x32xbf16>, vector<32x64xbf16>, vector<16x64xf32> -> vector<16x64xf32>
    %c0_15 = arith.constant 0 : index
    %c0_16 = arith.constant 0 : index
    %22 = vector.load %arg4[%c0_15, %c0_16] : memref<64x2xf32, #tpu.memory_space<vmem>>, vector<64x2xf32>
    %23 = arith.truncf %5 : vector<32x64xf32> to vector<32x64xbf16>
    %24 = arith.truncf %22 : vector<64x2xf32> to vector<64x2xbf16>
    %cst_17 = arith.constant dense<0.000000e+00> : vector<32x2xf32>
    %25 = tpu.matmul %23, %24, %cst_17 {dimension_numbers = #tpu.dot_dimension_numbers<[1], [0], [0], [1], [0, 0, 1, 1], [], []>} : vector<32x64xbf16>, vector<64x2xbf16>, vector<32x2xf32> -> vector<32x2xf32>
    %c0_18 = arith.constant 0 : index
    %c0_19 = arith.constant 0 : index
    %26 = vector.load %arg1[%c0_18, %c0_19] : memref<8x256xf32, #tpu.memory_space<vmem>>, vector<4x256xf32>
    %cst_20 = arith.constant dense<0.000000e+00> : vector<8x256xf32>
    %27 = tpu.matmul %0, %26, %cst_20 {dimension_numbers = #tpu.dot_dimension_numbers<[1], [0], [0], [1], [0, 0, 1, 1], [], []>} : vector<8x4xf32>, vector<4x256xf32>, vector<8x256xf32> -> vector<8x256xf32>
    %28 = vector.broadcast %1 : vector<8x1xf32> to vector<8x256xf32>
    %29 = arith.addf %27, %28 : vector<8x256xf32>
    %c0_21 = arith.constant 0 : index
    %c0_22 = arith.constant 0 : index
    %30 = memref.load %arg0[%c0_21, %c0_22] : memref<2x2xf32, #tpu.memory_space<smem>>
    %c0_23 = arith.constant 0 : index
    %c1 = arith.constant 1 : index
    %31 = memref.load %arg0[%c0_23, %c1] : memref<2x2xf32, #tpu.memory_space<smem>>
    %c0_24 = arith.constant 0 : index
    %c0_25 = arith.constant 0 : index
    %32 = vector.load %arg2[%c0_24, %c0_25] : memref<16x256xf32, #tpu.memory_space<vmem>>, vector<8x256xf32>
    %33 = vector.broadcast %30 : f32 to vector<8x256xf32>
    %34 = arith.mulf %29, %33 : vector<8x256xf32>
    %35 = vector.broadcast %31 : f32 to vector<8x256xf32>
    %36 = arith.mulf %32, %35 : vector<8x256xf32>
    %37 = arith.addf %34, %36 : vector<8x256xf32>
    %cst_26 = arith.constant dense<0.000000e+00> : vector<32x256xf32>
    %38 = tpu.matmul %4, %37, %cst_26 {dimension_numbers = #tpu.dot_dimension_numbers<[1], [0], [0], [1], [0, 0, 1, 1], [], []>} : vector<32x8xf32>, vector<8x256xf32>, vector<32x256xf32> -> vector<32x256xf32>
    %39 = vector.extract_strided_slice %25 {offsets = [0, 0], sizes = [32, 1], strides = [1, 1]} : vector<32x2xf32> to vector<32x1xf32>
    %40 = vector.broadcast %39 : vector<32x1xf32> to vector<32x256xf32>
    %41 = arith.addf %38, %40 : vector<32x256xf32>
    %42 = arith.negf %41 : vector<32x256xf32>
    %43 = math.exp %42 : vector<32x256xf32>
    %cst_27 = arith.constant 1.000000e+00 : f32
    %44 = vector.broadcast %cst_27 : f32 to vector<32x256xf32>
    %45 = arith.addf %44, %43 : vector<32x256xf32>
    %46 = arith.divf %44, %45 : vector<32x256xf32>
    %47 = arith.mulf %41, %46 : vector<32x256xf32>
    %48 = arith.truncf %6 : vector<32x32xf32> to vector<32x32xbf16>
    %49 = arith.truncf %47 : vector<32x256xf32> to vector<32x256xbf16>
    %cst_28 = arith.constant dense<0.000000e+00> : vector<32x256xf32>
    %50 = tpu.matmul %48, %49, %cst_28 {dimension_numbers = #tpu.dot_dimension_numbers<[1], [0], [0], [1], [0, 0, 1, 1], [], []>} : vector<32x32xbf16>, vector<32x256xbf16>, vector<32x256xf32> -> vector<32x256xf32>
    %51 = vector.extract_strided_slice %21 {offsets = [0, 0], sizes = [8, 32], strides = [1, 1]} : vector<16x64xf32> to vector<8x32xf32>
    %52 = vector.extract_strided_slice %21 {offsets = [0, 32], sizes = [8, 32], strides = [1, 1]} : vector<16x64xf32> to vector<8x32xf32>
    %53 = arith.truncf %51 : vector<8x32xf32> to vector<8x32xbf16>
    %54 = arith.truncf %50 : vector<32x256xf32> to vector<32x256xbf16>
    %cst_29 = arith.constant dense<0.000000e+00> : vector<8x256xf32>
    %55 = tpu.matmul %53, %54, %cst_29 {dimension_numbers = #tpu.dot_dimension_numbers<[1], [0], [0], [1], [0, 0, 1, 1], [], []>} : vector<8x32xbf16>, vector<32x256xbf16>, vector<8x256xf32> -> vector<8x256xf32>
    %cst_30 = arith.constant dense<0xFF800000> : vector<256xf32>
    %56 = vector.multi_reduction <maximumf>, %55, %cst_30 [0] : vector<8x256xf32> to vector<256xf32>
    %57 = vector.shape_cast %56 : vector<256xf32> to vector<1x256xf32>
    %58 = vector.broadcast %57 : vector<1x256xf32> to vector<8x256xf32>
    %59 = arith.subf %55, %58 : vector<8x256xf32>
    %60 = math.exp %59 : vector<8x256xf32>
    %cst_31 = arith.constant dense<0.000000e+00> : vector<256xf32>
    %61 = vector.multi_reduction <add>, %60, %cst_31 [0] : vector<8x256xf32> to vector<256xf32>
    %62 = vector.shape_cast %61 : vector<256xf32> to vector<1x256xf32>
    %63 = tpu.reciprocal %62 {approx = true} : vector<1x256xf32> -> vector<1x256xf32>
    %64 = vector.broadcast %63 : vector<1x256xf32> to vector<8x256xf32>
    %65 = arith.mulf %60, %64 : vector<8x256xf32>
    %cst_32 = arith.constant dense<0.000000e+00> : vector<32x256xf32>
    %66 = tpu.matmul %52, %65, %cst_32 {dimension_numbers = #tpu.dot_dimension_numbers<[0], [0], [1], [1], [0, 1, 1, 1], [], []>} : vector<8x32xf32>, vector<8x256xf32>, vector<32x256xf32> -> vector<32x256xf32>
    %67 = arith.truncf %8 : vector<32x32xf32> to vector<32x32xbf16>
    %68 = arith.truncf %66 : vector<32x256xf32> to vector<32x256xbf16>
    %cst_33 = arith.constant dense<0.000000e+00> : vector<32x256xf32>
    %69 = tpu.matmul %67, %68, %cst_33 {dimension_numbers = #tpu.dot_dimension_numbers<[1], [0], [0], [1], [0, 0, 1, 1], [], []>} : vector<32x32xbf16>, vector<32x256xbf16>, vector<32x256xf32> -> vector<32x256xf32>
    %70 = arith.addf %47, %69 : vector<32x256xf32>
    %71 = arith.truncf %9 : vector<8x32xf32> to vector<8x32xbf16>
    %72 = arith.truncf %70 : vector<32x256xf32> to vector<32x256xbf16>
    %cst_34 = arith.constant dense<0.000000e+00> : vector<8x256xf32>
    %73 = tpu.matmul %71, %72, %cst_34 {dimension_numbers = #tpu.dot_dimension_numbers<[1], [0], [0], [1], [0, 0, 1, 1], [], []>} : vector<8x32xbf16>, vector<32x256xbf16>, vector<8x256xf32> -> vector<8x256xf32>
    %74 = arith.addf %37, %73 : vector<8x256xf32>
    %cst_35 = arith.constant dense<0.000000e+00> : vector<4x256xf32>
    %75 = tpu.matmul %10, %74, %cst_35 {dimension_numbers = #tpu.dot_dimension_numbers<[1], [0], [0], [1], [0, 0, 1, 1], [], []>} : vector<4x8xf32>, vector<8x256xf32>, vector<4x256xf32> -> vector<4x256xf32>
    %76 = vector.broadcast %11 : vector<4x1xf32> to vector<4x256xf32>
    %77 = arith.addf %75, %76 : vector<4x256xf32>
    %c4 = arith.constant 4 : index
    %c0_36 = arith.constant 0 : index
    %78 = vector.load %arg1[%c4, %c0_36] : memref<8x256xf32, #tpu.memory_space<vmem>>, vector<4x256xf32>
    %cst_37 = arith.constant dense<0.000000e+00> : vector<8x256xf32>
    %79 = tpu.matmul %0, %78, %cst_37 {dimension_numbers = #tpu.dot_dimension_numbers<[1], [0], [0], [1], [0, 0, 1, 1], [], []>} : vector<8x4xf32>, vector<4x256xf32>, vector<8x256xf32> -> vector<8x256xf32>
    %80 = vector.broadcast %1 : vector<8x1xf32> to vector<8x256xf32>
    %81 = arith.addf %79, %80 : vector<8x256xf32>
    %c1_38 = arith.constant 1 : index
    %c0_39 = arith.constant 0 : index
    %82 = memref.load %arg0[%c1_38, %c0_39] : memref<2x2xf32, #tpu.memory_space<smem>>
    %c1_40 = arith.constant 1 : index
    %c1_41 = arith.constant 1 : index
    %83 = memref.load %arg0[%c1_40, %c1_41] : memref<2x2xf32, #tpu.memory_space<smem>>
    %c8_42 = arith.constant 8 : index
    %c0_43 = arith.constant 0 : index
    %84 = vector.load %arg2[%c8_42, %c0_43] : memref<16x256xf32, #tpu.memory_space<vmem>>, vector<8x256xf32>
    %85 = vector.broadcast %82 : f32 to vector<8x256xf32>
    %86 = arith.mulf %81, %85 : vector<8x256xf32>
    %87 = vector.broadcast %83 : f32 to vector<8x256xf32>
    %88 = arith.mulf %84, %87 : vector<8x256xf32>
    %89 = arith.addf %86, %88 : vector<8x256xf32>
    %cst_44 = arith.constant dense<0.000000e+00> : vector<32x256xf32>
    %90 = tpu.matmul %4, %89, %cst_44 {dimension_numbers = #tpu.dot_dimension_numbers<[1], [0], [0], [1], [0, 0, 1, 1], [], []>} : vector<32x8xf32>, vector<8x256xf32>, vector<32x256xf32> -> vector<32x256xf32>
    %91 = vector.extract_strided_slice %25 {offsets = [0, 1], sizes = [32, 1], strides = [1, 1]} : vector<32x2xf32> to vector<32x1xf32>
    %92 = vector.broadcast %91 : vector<32x1xf32> to vector<32x256xf32>
    %93 = arith.addf %90, %92 : vector<32x256xf32>
    %94 = arith.negf %93 : vector<32x256xf32>
    %95 = math.exp %94 : vector<32x256xf32>
    %cst_45 = arith.constant 1.000000e+00 : f32
    %96 = vector.broadcast %cst_45 : f32 to vector<32x256xf32>
    %97 = arith.addf %96, %95 : vector<32x256xf32>
    %98 = arith.divf %96, %97 : vector<32x256xf32>
    %99 = arith.mulf %93, %98 : vector<32x256xf32>
    %100 = arith.truncf %6 : vector<32x32xf32> to vector<32x32xbf16>
    %101 = arith.truncf %99 : vector<32x256xf32> to vector<32x256xbf16>
    %cst_46 = arith.constant dense<0.000000e+00> : vector<32x256xf32>
    %102 = tpu.matmul %100, %101, %cst_46 {dimension_numbers = #tpu.dot_dimension_numbers<[1], [0], [0], [1], [0, 0, 1, 1], [], []>} : vector<32x32xbf16>, vector<32x256xbf16>, vector<32x256xf32> -> vector<32x256xf32>
    %103 = vector.extract_strided_slice %21 {offsets = [8, 0], sizes = [8, 32], strides = [1, 1]} : vector<16x64xf32> to vector<8x32xf32>
    %104 = vector.extract_strided_slice %21 {offsets = [8, 32], sizes = [8, 32], strides = [1, 1]} : vector<16x64xf32> to vector<8x32xf32>
    %105 = arith.truncf %103 : vector<8x32xf32> to vector<8x32xbf16>
    %106 = arith.truncf %102 : vector<32x256xf32> to vector<32x256xbf16>
    %cst_47 = arith.constant dense<0.000000e+00> : vector<8x256xf32>
    %107 = tpu.matmul %105, %106, %cst_47 {dimension_numbers = #tpu.dot_dimension_numbers<[1], [0], [0], [1], [0, 0, 1, 1], [], []>} : vector<8x32xbf16>, vector<32x256xbf16>, vector<8x256xf32> -> vector<8x256xf32>
    %cst_48 = arith.constant dense<0xFF800000> : vector<256xf32>
    %108 = vector.multi_reduction <maximumf>, %107, %cst_48 [0] : vector<8x256xf32> to vector<256xf32>
    %109 = vector.shape_cast %108 : vector<256xf32> to vector<1x256xf32>
    %110 = vector.broadcast %109 : vector<1x256xf32> to vector<8x256xf32>
    %111 = arith.subf %107, %110 : vector<8x256xf32>
    %112 = math.exp %111 : vector<8x256xf32>
    %cst_49 = arith.constant dense<0.000000e+00> : vector<256xf32>
    %113 = vector.multi_reduction <add>, %112, %cst_49 [0] : vector<8x256xf32> to vector<256xf32>
    %114 = vector.shape_cast %113 : vector<256xf32> to vector<1x256xf32>
    %115 = tpu.reciprocal %114 {approx = true} : vector<1x256xf32> -> vector<1x256xf32>
    %116 = vector.broadcast %115 : vector<1x256xf32> to vector<8x256xf32>
    %117 = arith.mulf %112, %116 : vector<8x256xf32>
    %cst_50 = arith.constant dense<0.000000e+00> : vector<32x256xf32>
    %118 = tpu.matmul %104, %117, %cst_50 {dimension_numbers = #tpu.dot_dimension_numbers<[0], [0], [1], [1], [0, 1, 1, 1], [], []>} : vector<8x32xf32>, vector<8x256xf32>, vector<32x256xf32> -> vector<32x256xf32>
    %119 = arith.truncf %8 : vector<32x32xf32> to vector<32x32xbf16>
    %120 = arith.truncf %118 : vector<32x256xf32> to vector<32x256xbf16>
    %cst_51 = arith.constant dense<0.000000e+00> : vector<32x256xf32>
    %121 = tpu.matmul %119, %120, %cst_51 {dimension_numbers = #tpu.dot_dimension_numbers<[1], [0], [0], [1], [0, 0, 1, 1], [], []>} : vector<32x32xbf16>, vector<32x256xbf16>, vector<32x256xf32> -> vector<32x256xf32>
    %122 = arith.addf %99, %121 : vector<32x256xf32>
    %123 = arith.truncf %9 : vector<8x32xf32> to vector<8x32xbf16>
    %124 = arith.truncf %122 : vector<32x256xf32> to vector<32x256xbf16>
    %cst_52 = arith.constant dense<0.000000e+00> : vector<8x256xf32>
    %125 = tpu.matmul %123, %124, %cst_52 {dimension_numbers = #tpu.dot_dimension_numbers<[1], [0], [0], [1], [0, 0, 1, 1], [], []>} : vector<8x32xbf16>, vector<32x256xbf16>, vector<8x256xf32> -> vector<8x256xf32>
    %126 = arith.addf %89, %125 : vector<8x256xf32>
    %cst_53 = arith.constant dense<0.000000e+00> : vector<4x256xf32>
    %127 = tpu.matmul %10, %126, %cst_53 {dimension_numbers = #tpu.dot_dimension_numbers<[1], [0], [0], [1], [0, 0, 1, 1], [], []>} : vector<4x8xf32>, vector<8x256xf32>, vector<4x256xf32> -> vector<4x256xf32>
    %128 = vector.broadcast %11 : vector<4x1xf32> to vector<4x256xf32>
    %129 = arith.addf %127, %128 : vector<4x256xf32>
    %130 = tpu.concatenate %77, %129 in 0 : vector<4x256xf32>, vector<4x256xf32> -> vector<8x256xf32>
    %c0_54 = arith.constant 0 : index
    %c0_55 = arith.constant 0 : index
    %131 = vector.load %arg6[%c0_54, %c0_55] : memref<8x256xf32, #tpu.memory_space<vmem>>, vector<8x256xf32>
    tpu.vector_store %arg6[%c0_54, %c0_55], %130 {strides = array<i32>} : memref<8x256xf32, #tpu.memory_space<vmem>>, vector<8x256xf32>,
    return
  }
}

</mosaic_0001>

<bundles_post_ra>
// kernel: latent_diffusion_forward.1
= control target key start
LH: loop header
LB: loop body
LE: loop exit
PB: predicated region body
PF: predicated region fallthrough
CT: control target
= control target key end

     0   :  { %11 = vsyncpa [#allocation3], 0  ;;  %s2388_s0 = inlined_call_operand.vmem [shape: f32[2,2], index: 0, kind: input, shape index: {}]   ;;  %s2389_s1 = inlined_call_operand.vmem [shape: f32[8,256], index: 1, kind: input, shape index: {}]   ;;  %s2390_s2 = inlined_call_operand.vmem [shape: f32[16,256], index: 2, kind: input, shape index: {}]   ;;  %s2391_s3 = inlined_call_operand.vmem [shape: f32[16,32], index: 3, kind: input, shape index: {}]   ;;  %s2392_s4 = inlined_call_operand.vmem [shape: f32[64,2], index: 4, kind: input, shape index: {}]   ;;  %s2393_s5 = inlined_call_operand.vmem [shape: f32[240,64], index: 5, kind: input, shape index: {}]   ;;  %s2394_s6 = inlined_call_operand.vmem [shape: f32[8,256], index: 6, kind: output, shape index: {}]  }
   0x1   :  { %s18_s23 = sshll.u32 %s2388_s0, 4  ;;  %s19_s23 = int_to_ptr.vmem [resolvable:$true] %s18_s23 }
   0x2   :  { %s1930_s24 = scalar_lea.vmem %s19_s23, 32  ;;  %p1935_p1 = scmp.lt.s32.totalorder %s19_s23, %s19_s23 }
   0x3   :  { %p1931_p0 = scmp.ne.s32.totalorder %s19_s23, %s1930_s24  ;;  %p1936_p2 = scmp.lt.s32.totalorder %s1930_s24, %s1930_s24 }
   0x5   :  { %p1937_p3 = por %p1936_p2, %p1935_p1 }
   0x7   :  { %p1938_p4 = pnand %p1937_p3, %p1931_p0 }
   0x9   :  { %1941 = shalt.err (!%p1938_p4)
}
   0xa   :  { %s1944_s25 = smov [#allocation2]  }
   0xb   :  { %21 = dma.vmem_to_smem %s19_s23, 32, %s1944_s25, [#allocation3]  }
   0xc   :  { %1942 = dma.done.wait [#allocation3], 32  }
   0xd   :  { %1943 = vsyncadd [#allocation3], 4294967264 }
   0xe   :  { %35 = sfence }
   0xf   :  { %v39_v0 = vld [vmem:[%s2393_s5 + $0x10] sm:$0xff]  ;;  %v40_v1 = vld [vmem:[%s2393_s5 + $0x18] sm:$0xff]  ;;  %v41_v2 = vld [vmem:[%s2393_s5 + $0x20] sm:$0xff]  ;;  %v1945_v3 = vmov 0.0   ;;  %vm1946_vm0 = vmmov 0   ;;  %vm76_vm1 = vcmask 261120  }
  0x10   :  { %1808 = vmatprep.subr.bf16.mxu0 %v1945_v3  ;;  %v70_v4 = vpack.c.bf16 %v40_v1, %v39_v0  ;;  %v42_v5 = vld [vmem:[%s2393_s5 + $0x28] sm:$0xff]  ;;  %1812 = vmatprep.mubr.msk.bf16.mxu0 %vm1946_vm0, %v1945_v3  ;;  %v170_v6 = vld [vmem:[%s2392_s4] sm:$0xff]  ;;  %v48_v12 = vld [vmem:[%s2393_s5 + $0x58] sm:$0xff]  ;;  %vm184_vm2 = vcmask 523264   ;;  %vm251_vm3 = vcmask 1043456   ;;  %v1947_v36 = vmov 0  }
  0x11   :  { %v171_v7 = vld [vmem:[%s2392_s4 + $0x8] sm:$0xff]  ;;  %1816 = vmatprep.subr.bf16.mxu1 %v1945_v3  ;;  %1820 = vmatprep.mubr.msk.bf16.mxu1 %vm1946_vm0, %v1945_v3  ;;  %v71_v8 = vpack.c.bf16 %v42_v5, %v41_v2  ;;  %v67_v9 = vld [vmem:[%s2391_s3] sm:$0xff]  ;;  %v172_v13 = vld [vmem:[%s2392_s4 + $0x10] sm:$0xff]  ;;  %vm247_vm4 = vcmask 31744   ;;  %v1948_v53 = vmov 1   ;;  %s1744_s27 = sld [smem:[#allocation2 + $0x1]] }
  0x12   :  { %1809 = vmatpush3.bf16.msra.mxu0 %v70_v4  ;;  %v68_v10 = vld [vmem:[%s2391_s3 + $0x8] sm:$0xff]  ;;  %v180_v11 = vpack.c.bf16 %v171_v7, %v170_v6  ;;  %v173_v14 = vld [vmem:[%s2392_s4 + $0x18] sm:$0xff]  ;;  %v49_v15 = vld [vmem:[%s2393_s5 + $0x60] sm:$0xff]  ;;  %1842 = vset.pattern.permute.xlu0 %v1947_v36  ;;  %s329_s28 = sld [smem:[#allocation2]]  ;;  %s1949_s29 = smov 96   ;;  %vm361_vm5 = vcmask 64512  }
  0x13   :  { %1810 = vmatprep.subr.bf16.mxu0 %v1945_v3  ;;  %v69_v16 = vpack.c.bf16 %v68_v10, %v67_v9  ;;  %v178_v17 = vpack.c.bf16 %v49_v15, %v48_v12  ;;  %v181_v18 = vpack.c.bf16 %v173_v14, %v172_v13  ;;  %v174_v19 = vld [vmem:[%s2392_s4 + $0x20] sm:$0xff]  ;;  %v175_v20 = vld [vmem:[%s2392_s4 + $0x28] sm:$0xff]  ;;  %v176_v22 = vld [vmem:[%s2392_s4 + $0x30] sm:$0xff]  ;;  %1843 = vset.pattern.permute.xlu1 %v1947_v36 }
  0x14   :  { %v182_v21 = vpack.c.bf16 %v175_v20, %v174_v19  ;;  %v177_v23 = vld [vmem:[%s2392_s4 + $0x38] sm:$0xff]  ;;  %v50_v25 = vld [vmem:[%s2393_s5 + $0x68] sm:$0xff]  ;;  %v51_v26 = vld [vmem:[%s2393_s5 + $0x70] sm:$0xff] }
  0x15   :  { %v183_v24 = vpack.c.bf16 %v177_v23, %v176_v22  ;;  %v179_v27 = vpack.c.bf16 %v51_v26, %v50_v25  ;;  %v56_v28 = vld [vmem:[%s2393_s5 + $0x98] sm:$0xff]  ;;  %v57_v29 = vld [vmem:[%s2393_s5 + $0xa0] sm:$0xff]  ;;  %v58_v30 = vld [vmem:[%s2393_s5 + $0xa8] sm:$0xff] }
  0x16   :  { %1811 = vmatpush3.bf16.msra.mxu0 %v71_v8  ;;  %v124_v31 = vpack.c.bf16 %v57_v29, %v56_v28  ;;  %v59_v32 = vld [vmem:[%s2393_s5 + $0xb0] sm:$0xff]  ;;  %v241_v34 = vld [vmem:[%s2389_s1 + $0x8] sm:$0xf]  ;;  %v240_v47 = vld [vmem:[%s2389_s1] sm:$0xf] }
  0x17   :  { %1824 = vmatprep.subr.bf16.mxu0 %v180_v11  ;;  %v125_v33 = vpack.c.bf16 %v59_v32, %v58_v30  ;;  %v38_v35 = vld [vmem:[%s2393_s5 + $0x8] sm:$0xff]  ;;  %v1736_v37 = vld [vmem:[%s2393_s5 + $0x30] ss:$0 sm:$0xff]  ;;  %v2085_v52 = vld [vmem:[%s2393_s5] sm:$0xff]  ;;  %v336_v58 = vstv %s1744_s27 }
  0x18   :  { %1817 = vmatpush3.bf16.msra.mxu1 %v124_v31  ;;  %244 = vperm.xlu0 %1842, %v38_v35   ;;  %v332_v59 = vld [vmem:[%s2390_s2 + $0x8] sm:$0xff]  ;;  %v331_v62 = vld [vmem:[%s2390_s2] sm:$0xff]  ;;  %v333_v63 = vstv %s329_s28  ;;  %v2113_v10 = vld [vmem:[%s2393_s5 + $0x38] sm:$0xff] }
  0x19   :  { %1813 = vmatmul.mubr.msk.bf16.vlgmr.msra.gmra.mrb[0].mxu0 %vm76_vm1, %v69_v16  ;;  %1818 = vmatprep.subr.bf16.mxu1 %v1945_v3  ;;  %v338_v4 = vmul.f32 %v336_v58, %v332_v59  ;;  %v337_v6 = vmul.f32 %v336_v58, %v331_v62  ;;  %v2133_v12 = vld [vmem:[%s2393_s5 + $0x48] sm:$0xff]  ;;  %v2141_v13 = vld [vmem:[%s2393_s5 + $0x50] sm:$0xff] }
  0x1a   :  { %1825 = vmatpush3.bf16.msra.mxu0 %v180_v11  ;;  %1832 = vmatprep.mubr.msk.bf16.mxu0 %vm184_vm2, %v178_v17  ;;  %v2123_v11 = vld [vmem:[%s2393_s5 + $0x40] sm:$0xff]  ;;  %v66_v22 = vld [vmem:[%s2393_s5 + $0xe8] sm:$0xf] }
  0x1b   :  { %1826 = vmatprep.subr.bf16.mxu0 %v181_v18 }
  0x1c   :  { %1819 = vmatpush3.bf16.msra.mxu1 %v125_v33 }
  0x1d   :  { %1741 = vmatprep.subr.msk.mxu1 %vm251_vm3, %v241_v34 }
  0x1e   :  { %1827 = vmatpush3.bf16.msra.mxu0 %v181_v18 }
  0x1f   :  { %1828 = vmatprep.subr.bf16.mxu0 %v182_v21 }
  0x22   :  { %1829 = vmatpush3.bf16.msra.mxu0 %v182_v21 }
  0x23   :  { %1830 = vmatprep.subr.bf16.mxu0 %v183_v24 }
  0x26   :  { %1831 = vmatpush3.bf16.msra.mxu0 %v183_v24 }
  0x29   :  { %1833 = vmatmul.mubr.msk.bf16.vlgmr.msra.gmra.mrb[4].mxu0 %vm184_vm2, %v179_v27 }
  0x2a   :  { %563 = vmatprep.mubr.bf16.mxu0 %v1947_v36 }
  0x97   :  { %v2099_v60 = vpop.permute.xlu0 %244 }
  0xec   :  { %v114_v38 = vpop.f32.mrb[0].mxu0 }
  0xed   :  { %v115_v39 = vadd.f32 %v1736_v37, %v114_v38  ;;  %v1814_v40 = vpop.f32.mrb[1].mxu0 }
  0xee   :  { %v117_v41 = vpop.f32.mrb[2].mxu0 }
  0xef   :  { %v118_v42 = vadd.f32 %v1736_v37, %v117_v41  ;;  %v1815_v43 = vpop.f32.mrb[3].mxu0  ;;  %1846 = vtanh.f32 %v115_v39 }
  0xf1   :  { %1848 = vtanh.f32 %v118_v42 }
  0xf9   :  { %v1847_v44 = vpop.eup %1846 }
  0xfb   :  { %v1849_v45 = vpop.eup %1848 }
  0xfc   :  { %v123_v46 = vpack.c.bf16 %v1849_v45, %v1847_v44  ;;  %v1834_v48 = vpop.f32.mrb[4].mxu0 }
  0xfd   :  { %v225_v49 = vpop.f32.mrb[5].mxu0 }
  0xfe   :  { %1821 = vmatmul.mubr.msk.bf16.vlgmr.msra.gmra.mrb[0].mxu1 %vm76_vm1, %v123_v46  ;;  %343 = vperm.xlu0 %1842, %v225_v49   ;;  %v1835_v50 = vpop.f32.mrb[6].mxu0 }
  0xff   :  { %1742 = vmatpush1.msk.msra.mxu1 %vm251_vm3, %v240_v47  ;;  %322 = vmatprep.mubr.f32.mxu1 %v1945_v3  ;;  %v228_v51 = vpop.f32.mrb[7].mxu0 }
 0x100   :  { %348 = vperm.xlu1 %1843, %v228_v51  }
 0x102   :  { %358 = vperm.xlu0 %1842, %v1835_v50  }
 0x104   :  { %353 = vperm.xlu1 %1843, %v1834_v48  }
 0x106   :  { %1743 = vmatmul.mubr.msk.f32.vlgmr.msra.gmra.mrb[4].mxu1 %vm247_vm4, %v2085_v52 }
 0x107   :  { %438 = vmatprep.mubr.f32.mxu1 %v1945_v3 }
 0x108   :  { %1844 = vset.pattern.permute.xlu1 %v1948_v53 }
 0x17d   :  { %v344_v23 = vpop.permute.xlu0 %343 }
 0x17f   :  { %v349_v14 = vpop.permute.xlu1 %348 }
 0x181   :  { %v359_v42 = vpop.permute.xlu0 %358 }
 0x183   :  { %v354_v15 = vpop.permute.xlu1 %353 }
 0x1d1   :  { %v2090_v54 = vpop.f32.mrb[0].mxu1 }
 0x1d2   :  { %v1822_v55 = vpop.f32.mrb[1].mxu1  ;;  %668 = vrot.lane.b32.xlu1 %v2090_v54, %s1949_s29 }
 0x1d3   :  { %v2094_v56 = vpop.f32.mrb[2].mxu1 }
 0x1d4   :  { %v1823_v57 = vpop.f32.mrb[3].mxu1 }
 0x1d6   :  { %1101 = vperm.xlu1 %1844, %v225_v49  }
 0x1d9   :  { %v324_v61 = vpop.f32.mrb[4].mxu1 }
 0x1da   :  { %v325_v0 = vadd.f32 %v324_v61, %v2099_v60  ;;  %1105 = vperm.xlu1 %1844, %v228_v51   ;;  %v326_v1 = vpop.f32.mrb[5].mxu1 }
 0x1db   :  { %v327_v2 = vadd.f32 %v326_v1, %v2099_v60 }
 0x1dc   :  { %v334_v5 = vmul.f32 %v333_v63, %v325_v0 }
 0x1dd   :  { %v335_v7 = vmul.f32 %v333_v63, %v327_v2 }
 0x1de   :  { %1109 = vperm.xlu1 %1844, %v1834_v48   ;;  %v2108_v9 = vadd.f32 %v337_v6, %v334_v5 }
 0x1df   :  { %v2106_v8 = vadd.f32 %v338_v4, %v335_v7 }
 0x1e1   :  { %374 = vmatprep.subr.mxu1 %v2106_v8 }
 0x1e2   :  { %1113 = vperm.xlu1 %1844, %v1835_v50   ;;  %375 = vmatpush1.msra.mxu1 %v2108_v9 }
 0x1e3   :  { %1745 = vmatmul.mubr.msk.f32.vlgmr.msra.gmra.mrb[6].mxu1 %vm361_vm5, %v2113_v10 }
 0x1e4   :  { %444 = vmatprep.mubr.f32.mxu1 %v1945_v3 }
 0x1e6   :  { %1402 = vrot.lane.b32.xlu1 %v2094_v56, %s1949_s29 }
 0x1e7   :  { %1746 = vmatmul.mubr.msk.f32.gmra.mrb[8].mxu1 %vm361_vm5, %v2123_v11 }
 0x1e8   :  { %450 = vmatprep.mubr.f32.mxu1 %v1945_v3 }
 0x1eb   :  { %1747 = vmatmul.mubr.msk.f32.gmra.mrb[10].mxu1 %vm361_vm5, %v2133_v12 }
 0x1ec   :  { %456 = vmatprep.mubr.f32.mxu1 %v1945_v3 }
 0x1ef   :  { %1748 = vmatmul.mubr.msk.f32.gmra.mrb[12].mxu1 %vm361_vm5, %v2141_v13 }
 0x1f0   :  { %624 = vmatprep.mubr.bf16.mxu1 %v1947_v36 }
 0x244   :  { %v669_v16 = vpop.permute.xlu1 %668 }
 0x245   :  { %671 = vxpose.xlu0.b32.start.end [1/1] (short) (narrow) %v669_v16, 32 }
 0x255   :  { %v2146_v17 = vpop.permute.xlu1 %1101 }
 0x259   :  { %v2148_v18 = vpop.permute.xlu1 %1105 }
 0x25d   :  { %v2150_v19 = vpop.permute.xlu1 %1109 }
 0x261   :  { %v2152_v20 = vpop.permute.xlu1 %1113 }
 0x265   :  { %v1403_v21 = vpop.permute.xlu1 %1402 }
 0x266   :  { %1405 = vxpose.xlu1.b32.start.end [1/1] (short) (narrow) %v1403_v21, 32 }
 0x27a   :  { %930 = vperm.xlu0 %1842, %v66_v22  }
 0x27e   :  { %1845 = vset.pattern.permute.xlu0 %v1948_v53 }
 0x2b6   :  { %v440_v24 = vpop.f32.mrb[6].mxu1 }
 0x2b7   :  { %v2157_v25 = vadd.f32 %v440_v24, %v344_v23  ;;  %v442_v26 = vpop.f32.mrb[7].mxu1 }
 0x2b8   :  { %v443_v27 = vadd.f32 %v442_v26, %v344_v23 }
 0x2b9   :  { %v1749_v28 = vmul.f32 -1.442695, %v2157_v25 }
 0x2ba   :  { %v1750_v29 = vmul.f32 -1.442695, %v443_v27  ;;  %v446_v30 = vpop.f32.mrb[8].mxu1 }
 0x2bb   :  { %1850 = vpow2.f32 %v1749_v28  ;;  %v447_v31 = vadd.f32 %v446_v30, %v349_v14  ;;  %v448_v32 = vpop.f32.mrb[9].mxu1 }
 0x2bc   :  { %1852 = vpow2.f32 %v1750_v29  ;;  %v449_v33 = vadd.f32 %v448_v32, %v349_v14 }
 0x2bd   :  { %v1751_v34 = vmul.f32 -1.442695, %v447_v31 }
 0x2be   :  { %v1752_v35 = vmul.f32 -1.442695, %v449_v33  ;;  %v452_v37 = vpop.f32.mrb[10].mxu1 }
 0x2bf   :  { %1854 = vpow2.f32 %v1751_v34  ;;  %v453_v38 = vadd.f32 %v452_v37, %v354_v15  ;;  %v454_v39 = vpop.f32.mrb[11].mxu1  ;;  %v53_v37 = vld [vmem:[%s2393_s5 + $0x80] sm:$0xff] }
 0x2c0   :  { %1856 = vpow2.f32 %v1752_v35  ;;  %v455_v40 = vadd.f32 %v454_v39, %v354_v15  ;;  %v52_v35 = vld [vmem:[%s2393_s5 + $0x78] sm:$0xff] }
 0x2c1   :  { %v1753_v41 = vmul.f32 -1.442695, %v453_v38 }
 0x2c2   :  { %v1754_v43 = vmul.f32 -1.442695, %v455_v40  ;;  %v458_v44 = vpop.f32.mrb[12].mxu1 }
 0x2c3   :  { %v459_v45 = vadd.f32 %v458_v44, %v359_v42  ;;  %v460_v46 = vpop.f32.mrb[13].mxu1 }
 0x2c4   :  { %1858 = vpow2.f32 %v1754_v43  ;;  %v461_v47 = vadd.f32 %v460_v46, %v359_v42  ;;  %v55_v42 = vld [vmem:[%s2393_s5 + $0x90] sm:$0xff] }
 0x2c5   :  { %v1851_v48 = vpop.eup %1850  ;;  %1860 = vpow2.f32 %v1753_v41  ;;  %v1755_v49 = vmul.f32 -1.442695, %v459_v45 }
 0x2c6   :  { %v1853_v50 = vpop.eup %1852  ;;  %v487_v51 = vadd.f32 1.0, %v1851_v48  ;;  %v1756_v53 = vmul.f32 -1.442695, %v461_v47 }
 0x2c7   :  { %v488_v55 = vadd.f32 1.0, %v1853_v50  ;;  %1862 = vpow2.f32 %v1755_v49 }
 0x2c8   :  { %1864 = vrcp.f32 %v487_v51 }
 0x2c9   :  { %v1855_v57 = vpop.eup %1854  ;;  %1866 = vpow2.f32 %v1756_v53 }
 0x2ca   :  { %v1857_v58 = vpop.eup %1856  ;;  %v489_v59 = vadd.f32 1.0, %v1855_v57  ;;  %1868 = vrcp.f32 %v488_v55 }
 0x2cb   :  { %v490_v61 = vadd.f32 1.0, %v1857_v58 }
 0x2cc   :  { %1870 = vrcp.f32 %v489_v59  ;;  %v584_v59 = vpack.c.bf16 %v2090_v54, %v2090_v54 }
 0x2cd   :  { %1872 = vrcp.f32 %v490_v61 }
 0x2ce   :  { %v1859_v62 = vpop.eup %1858 }
 0x2cf   :  { %v1861_v63 = vpop.eup %1860  ;;  %v492_v1 = vadd.f32 1.0, %v1859_v62 }
 0x2d0   :  { %v491_v2 = vadd.f32 1.0, %v1861_v63 }
 0x2d1   :  { %v1863_v0 = vpop.eup %1862 }
 0x2d2   :  { %v493_v4 = vadd.f32 1.0, %v1863_v0  ;;  %v1865_v5 = vpop.eup %1864 }
 0x2d3   :  { %v1867_v6 = vpop.eup %1866  ;;  %v2167_v24 = vmul.f32 %v1865_v5, %v2157_v25 }
 0x2d4   :  { %1874 = vrcp.f32 %v493_v4  ;;  %v1869_v7 = vpop.eup %1868  ;;  %v494_v14 = vadd.f32 1.0, %v1867_v6 }
 0x2d5   :  { %1876 = vrcp.f32 %v492_v1  ;;  %v2162_v22 = vmul.f32 %v1869_v7, %v443_v27 }
 0x2d6   :  { %v1871_v15 = vpop.eup %1870  ;;  %1878 = vrcp.f32 %v491_v2 }
 0x2d7   :  { %v1873_v16 = vpop.eup %1872  ;;  %v2160_v21 = vmul.f32 %v1871_v15, %v447_v31  ;;  %1880 = vrcp.f32 %v494_v14 }
 0x2d8   :  { %v2164_v23 = vmul.f32 %v1873_v16, %v449_v33 }
 0x2d9   :  { %v521_v28 = vpack.c.bf16 %v2160_v21, %v2167_v24 }
 0x2da   :  { %v522_v26 = vpack.c.bf16 %v2164_v23, %v2162_v22 }
 0x2dc   :  { %531 = vmatprep.subr.bf16.mxu0 %v522_v26 }
 0x2dd   :  { %532 = vmatpush1.bf16.msra.mxu0 %v521_v28 }
 0x2de   :  { %v1875_v29 = vpop.eup %1874 }
 0x2df   :  { %v1877_v30 = vpop.eup %1876  ;;  %v2173_v34 = vmul.f32 %v1875_v29, %v459_v45 }
 0x2e0   :  { %v1879_v31 = vpop.eup %1878  ;;  %v2175_v27 = vmul.f32 %v1877_v30, %v455_v40  ;;  %v2191_v40 = vpack.c.bf16 %v53_v37, %v52_v35 }
 0x2e1   :  { %v1881_v32 = vpop.eup %1880  ;;  %v2179_v25 = vmul.f32 %v1879_v31, %v453_v38  ;;  %v54_v38 = vld [vmem:[%s2393_s5 + $0x88] sm:$0xff] }
 0x2e2   :  { %v2177_v33 = vmul.f32 %v1881_v32, %v461_v47  ;;  %v2202_v43 = vpack.c.bf16 %v55_v42, %v54_v38 }
 0x2e3   :  { %v523_v41 = vpack.c.bf16 %v2173_v34, %v2179_v25 }
 0x2e4   :  { %v524_v39 = vpack.c.bf16 %v2177_v33, %v2175_v27 }
 0x2e6   :  { %533 = vmatprep.subr.bf16.mxu0 %v524_v39 }
 0x2e7   :  { %534 = vmatpush1.bf16.msra.mxu0 %v523_v41 }
 0x2ea   :  { %1757 = vmatmul.mubr.msk.bf16.vlgmr.msra.gmra.mrb[8].mxu0 %vm76_vm1, %v2191_v40 }
 0x2eb   :  { %573 = vmatprep.mubr.bf16.mxu0 %v1947_v36 }
 0x2f2   :  { %1758 = vmatmul.mubr.msk.bf16.gmra.mrb[12].mxu0 %vm76_vm1, %v2202_v43 }
 0x2f3   :  { %848 = vmatprep.mubr.bf16.mxu0 %v1947_v36 }
 0x3bd   :  { %v565_v44 = vpop.f32.mrb[8].mxu0 }
 0x3be   :  { %v567_v45 = vpop.f32.mrb[9].mxu0 }
 0x3bf   :  { %v569_v46 = vpop.f32.mrb[10].mxu0 }
 0x3c0   :  { %v585_v47 = vpack.c.bf16 %v569_v46, %v565_v44  ;;  %v571_v48 = vpop.f32.mrb[11].mxu0 }
 0x3c1   :  { %v586_v49 = vpack.c.bf16 %v571_v48, %v567_v45 }
 0x3c3   :  { %592 = vmatprep.subr.bf16.mxu1 %v586_v49 }
 0x3c4   :  { %593 = vmatpush1.bf16.msra.mxu1 %v585_v47 }
 0x3c5   :  { %v575_v50 = vpop.f32.mrb[12].mxu0 }
 0x3c6   :  { %v577_v51 = vpop.f32.mrb[13].mxu0 }
 0x3c7   :  { %v579_v53 = vpop.f32.mrb[14].mxu0 }
 0x3c8   :  { %v587_v55 = vpack.c.bf16 %v579_v53, %v575_v50  ;;  %v581_v57 = vpop.f32.mrb[15].mxu0  ;;  %v687_v53 = vpop.trf.xlu0 }
 0x3c9   :  { %v588_v58 = vpack.c.bf16 %v581_v57, %v577_v51 }
 0x3cb   :  { %594 = vmatprep.subr.bf16.mxu1 %v588_v58 }
 0x3cc   :  { %595 = vmatpush1.bf16.msra.mxu1 %v587_v55 }
 0x3cf   :  { %1759 = vmatmul.mubr.msk.bf16.vlgmr.msra.gmra.mrb[16].mxu1 %vm76_vm1, %v584_v59 }
 0x3d0   :  { %779 = vmatprep.mubr.f32.mxu1 %v1945_v3 }
 0x4a2   :  { %v626_v61 = vpop.f32.mrb[16].mxu1 }
 0x4a3   :  { %v633_v62 = vrot.slane %v626_v61, 4  ;;  %v628_v63 = vpop.f32.mrb[17].mxu1 }
 0x4a4   :  { %v639_v0 = vrot.slane %v628_v63, 4  ;;  %v630_v1 = vpop.f32.mrb[18].mxu1 }
 0x4a5   :  { %v634_v2 = vmax.f32 %v626_v61, %v633_v62  ;;  %v631_v4 = vpop.f32.mrb[19].mxu1 }
 0x4a6   :  { %v640_v5 = vmax.f32 %v628_v63, %v639_v0 }
 0x4a7   :  { %v635_v6 = vrot.slane %v634_v2, 2 }
 0x4a8   :  { %v641_v7 = vrot.slane %v640_v5, 2 }
 0x4a9   :  { %v636_v14 = vmax.f32 %v634_v2, %v635_v6 }
 0x4aa   :  { %v642_v15 = vmax.f32 %v640_v5, %v641_v7 }
 0x4ab   :  { %v637_v16 = vrot.slane %v636_v14, 1 }
 0x4ac   :  { %v643_v26 = vrot.slane %v642_v15, 1 }
 0x4ad   :  { %v638_v28 = vmax.f32 %v636_v14, %v637_v16 }
 0x4ae   :  { %v644_v54 = vmax.f32 %v642_v15, %v643_v26 }
 0x4af   :  { %v645_v29 = vsub.f32 %v626_v61, %v638_v28  ;;  %v688_v61 = vpop.trf.xlu0  ;;  %v60_v28 = vld [vmem:[%s2393_s5 + $0xb8] sm:$0xff] }
 0x4b0   :  { %v646_v30 = vsub.f32 %v628_v63, %v644_v54  ;;  %v61_v54 = vld [vmem:[%s2393_s5 + $0xc0] sm:$0xff] }
 0x4b1   :  { %v647_v31 = vmul.f32 1.442695, %v645_v29 }
 0x4b2   :  { %v649_v32 = vmul.f32 1.442695, %v646_v30  ;;  %v2225_v30 = vpack.c.bf16 %v61_v54, %v60_v28 }
 0x4b3   :  { %1882 = vpow2.f32 %v647_v31  ;;  %v689_v62 = vpop.trf.xlu0  ;;  %v62_v31 = vld [vmem:[%s2393_s5 + $0xc8] sm:$0xff] }
 0x4b4   :  { %1884 = vpow2.f32 %v649_v32  ;;  %v63_v32 = vld [vmem:[%s2393_s5 + $0xd0] sm:$0xff] }
 0x4b7   :  { %v690_v63 = vpop.trf.xlu0 }
 0x4bd   :  { %v1883_v35 = vpop.eup %1882 }
 0x4be   :  { %v1885_v37 = vpop.eup %1884  ;;  %v651_v39 = vrot.slane %v1883_v35, 4 }
 0x4bf   :  { %v657_v41 = vrot.slane %v1885_v37, 4 }
 0x4c0   :  { %v652_v38 = vadd.f32 %v1883_v35, %v651_v39 }
 0x4c1   :  { %v658_v42 = vadd.f32 %v1885_v37, %v657_v41 }
 0x4c2   :  { %v653_v44 = vrot.slane %v652_v38, 2 }
 0x4c3   :  { %v659_v45 = vrot.slane %v658_v42, 2 }
 0x4c4   :  { %v654_v46 = vadd.f32 %v653_v44, %v652_v38 }
 0x4c5   :  { %v660_v47 = vadd.f32 %v659_v45, %v658_v42 }
 0x4c6   :  { %v655_v48 = vrot.slane %v654_v46, 1 }
 0x4c7   :  { %v661_v49 = vrot.slane %v660_v47, 1 }
 0x4c8   :  { %v656_v50 = vadd.f32 %v655_v48, %v654_v46 }
 0x4c9   :  { %v662_v51 = vadd.f32 %v661_v49, %v660_v47 }
 0x4ca   :  { %1886 = vrcp.f32 %v656_v50 }
 0x4cb   :  { %1888 = vrcp.f32 %v662_v51 }
 0x4d4   :  { %v1887_v55 = vpop.eup %1886 }
 0x4d5   :  { %v1889_v57 = vpop.eup %1888  ;;  %v665_v59 = vmul.f32 %v1887_v55, %v1883_v35  ;;  %v2236_v35 = vpack.c.bf16 %v63_v32, %v62_v31 }
 0x4d6   :  { %v666_v58 = vmul.f32 %v1889_v57, %v1885_v37 }
 0x4d8   :  { %715 = vmatprep.subr.mxu1 %v666_v58 }
 0x4d9   :  { %716 = vmatpush1.msra.mxu1 %v665_v59 }
 0x4da   :  { %1760 = vmatmul.mubr.msk.f32.vlgmr.msra.gmra.mrb[14].mxu1 %vm361_vm5, %v687_v53 }
 0x4db   :  { %785 = vmatprep.mubr.f32.mxu1 %v1945_v3 }
 0x4de   :  { %1761 = vmatmul.mubr.msk.f32.gmra.mrb[20].mxu1 %vm361_vm5, %v688_v61 }
 0x4df   :  { %791 = vmatprep.mubr.f32.mxu1 %v1945_v3 }
 0x4e2   :  { %1762 = vmatmul.mubr.msk.f32.gmra.mrb[22].mxu1 %vm361_vm5, %v689_v62 }
 0x4e3   :  { %797 = vmatprep.mubr.f32.mxu1 %v1945_v3 }
 0x4e6   :  { %1763 = vmatmul.mubr.msk.f32.gmra.mrb[24].mxu1 %vm361_vm5, %v690_v63 }
 0x4e7   :  { %917 = vmatprep.mubr.bf16.mxu1 %v1947_v36 }
 0x5ad   :  { %v781_v0 = vpop.f32.mrb[14].mxu1 }
 0x5ae   :  { %v783_v1 = vpop.f32.mrb[15].mxu1 }
 0x5b1   :  { %v787_v2 = vpop.f32.mrb[20].mxu1 }
 0x5b2   :  { %v806_v4 = vpack.c.bf16 %v787_v2, %v781_v0  ;;  %v789_v5 = vpop.f32.mrb[21].mxu1  ;;  %v2268_v2 = vld [vmem:[%s2393_s5 + $0xe0] sm:$0xf] }
 0x5b3   :  { %v807_v6 = vpack.c.bf16 %v789_v5, %v783_v1 }
 0x5b5   :  { %v793_v7 = vpop.f32.mrb[22].mxu1  ;;  %816 = vmatprep.subr.bf16.mxu0 %v807_v6  ;;  %v1091_v6 = vld [vmem:[%s2390_s2 + $0x18] sm:$0xff] }
 0x5b6   :  { %v795_v14 = vpop.f32.mrb[23].mxu1  ;;  %817 = vmatpush1.bf16.msra.mxu0 %v806_v4 }
 0x5b9   :  { %v799_v15 = vpop.f32.mrb[24].mxu1 }
 0x5ba   :  { %v808_v16 = vpack.c.bf16 %v799_v15, %v793_v7  ;;  %v801_v26 = vpop.f32.mrb[25].mxu1 }
 0x5bb   :  { %v809_v29 = vpack.c.bf16 %v801_v26, %v795_v14  ;;  %v1090_v14 = vld [vmem:[%s2390_s2 + $0x10] sm:$0xff] }
 0x5bd   :  { %818 = vmatprep.subr.bf16.mxu0 %v809_v29 }
 0x5be   :  { %819 = vmatpush1.bf16.msra.mxu0 %v808_v16 }
 0x5c1   :  { %1764 = vmatmul.mubr.msk.bf16.vlgmr.msra.gmra.mrb[16].mxu0 %vm76_vm1, %v2225_v30 }
 0x5c2   :  { %858 = vmatprep.mubr.bf16.mxu0 %v1947_v36 }
 0x5c9   :  { %1765 = vmatmul.mubr.msk.bf16.gmra.mrb[20].mxu0 %vm76_vm1, %v2236_v35 }
 0x5ca   :  { %1000 = vmatprep.mubr.f32.mxu0 %v1945_v3 }
 0x694   :  { %v850_v37 = vpop.f32.mrb[16].mxu0 }
 0x695   :  { %v852_v39 = vpop.f32.mrb[17].mxu0  ;;  %v869_v38 = vadd.f32 %v850_v37, %v2167_v24 }
 0x696   :  { %v854_v41 = vpop.f32.mrb[18].mxu0  ;;  %v870_v45 = vadd.f32 %v852_v39, %v2162_v22  ;;  %v64_v22 = vld [vmem:[%s2393_s5 + $0xd8] sm:$0xff]  ;;  %s1771_s5 = sld [smem:[#allocation2 + $0x80]] }
 0x697   :  { %v871_v42 = vadd.f32 %v854_v41, %v2160_v21  ;;  %v856_v44 = vpop.f32.mrb[19].mxu0  ;;  %v2252_v59 = vpack.c.bf16 %v64_v22, %v64_v22 }
 0x698   :  { %v872_v46 = vadd.f32 %v856_v44, %v2164_v23 }
 0x699   :  { %v878_v47 = vpack.c.bf16 %v871_v42, %v869_v38 }
 0x69a   :  { %v879_v48 = vpack.c.bf16 %v872_v46, %v870_v45 }
 0x69c   :  { %v860_v49 = vpop.f32.mrb[20].mxu0  ;;  %885 = vmatprep.subr.bf16.mxu1 %v879_v48  ;;  %v1092_v15 = vstv %s1771_s5 }
 0x69d   :  { %v862_v50 = vpop.f32.mrb[21].mxu0  ;;  %886 = vmatpush1.bf16.msra.mxu1 %v878_v47  ;;  %v873_v53 = vadd.f32 %v860_v49, %v2179_v25 }
 0x69e   :  { %v864_v51 = vpop.f32.mrb[22].mxu0  ;;  %v874_v24 = vadd.f32 %v862_v50, %v2175_v27 }
 0x69f   :  { %v875_v55 = vadd.f32 %v864_v51, %v2173_v34  ;;  %v866_v57 = vpop.f32.mrb[23].mxu0  ;;  %v1008_v34 = vld [vmem:[%s2389_s1 + $0x8] sm:$0xf0] }
 0x6a0   :  { %v876_v21 = vadd.f32 %v866_v57, %v2177_v33  ;;  %v1007_v33 = vld [vmem:[%s2389_s1] sm:$0xf0]  ;;  %v1012_v63 = vrot.slane %v1008_v34, 4  ;;  %s1772_s1 = sld [smem:[#allocation2 + $0x81]] }
 0x6a1   :  { %v880_v58 = vpack.c.bf16 %v875_v55, %v873_v53  ;;  %v1011_v4 = vrot.slane %v1007_v33, 4 }
 0x6a2   :  { %v881_v23 = vpack.c.bf16 %v876_v21, %v874_v24 }
 0x6a4   :  { %887 = vmatprep.subr.bf16.mxu1 %v881_v23 }
 0x6a5   :  { %888 = vmatpush1.bf16.msra.mxu1 %v880_v58 }
 0x6a6   :  { %v1095_v5 = vstv %s1772_s1 }
 0x6a7   :  { %v1097_v28 = vmul.f32 %v1095_v5, %v1091_v6  ;;  %v1096_v29 = vmul.f32 %v1095_v5, %v1090_v14 }
 0x6a8   :  { %1766 = vmatmul.mubr.msk.bf16.vlgmr.msra.gmra.mrb[28].mxu1 %vm76_vm1, %v2252_v59 }
 0x6a9   :  { %1180 = vmatprep.mubr.f32.mxu1 %v1945_v3 }
 0x77b   :  { %v919_v27 = vpop.f32.mrb[28].mxu1 }
 0x77c   :  { %v921_v25 = vpop.f32.mrb[29].mxu1  ;;  %v926_v0 = vadd.f32 %v919_v27, %v2108_v9 }
 0x77d   :  { %v927_v61 = vadd.f32 %v921_v25, %v2106_v8  ;;  %v923_v62 = vpop.f32.mrb[30].mxu1 }
 0x77e   :  { %v924_v1 = vpop.f32.mrb[31].mxu1 }
 0x77f   :  { %936 = vmatprep.subr.mxu0 %v927_v61 }
 0x780   :  { %937 = vmatpush1.msra.mxu0 %v926_v0 }
 0x781   :  { %1767 = vmatmul.mubr.msk.f32.vlgmr.msra.gmra.mrb[24].mxu0 %vm361_vm5, %v2268_v2  ;;  %1768 = vmatprep.subr.msk.mxu0 %vm251_vm3, %v1012_v63 }
 0x782   :  { %1769 = vmatpush1.msk.msra.mxu0 %vm251_vm3, %v1011_v4  ;;  %1081 = vmatprep.mubr.f32.mxu0 %v1945_v3 }
 0x785   :  { %1770 = vmatmul.mubr.msk.f32.vlgmr.msra.gmra.mrb[26].mxu0 %vm247_vm4, %v2085_v52 }
 0x786   :  { %1297 = vmatprep.mubr.bf16.mxu0 %v1947_v36 }
 0x854   :  { %v2278_v8 = vpop.f32.mrb[24].mxu0 }
 0x855   :  { %v2280_v9 = vpop.f32.mrb[25].mxu0 }
 0x858   :  { %v1083_v7 = vpop.f32.mrb[26].mxu0 }
 0x859   :  { %v1084_v52 = vadd.f32 %v1083_v7, %v2099_v60  ;;  %v1085_v16 = vpop.f32.mrb[27].mxu0 }
 0x85a   :  { %v1086_v26 = vadd.f32 %v1085_v16, %v2099_v60 }
 0x85b   :  { %v1093_v54 = vmul.f32 %v1092_v15, %v1084_v52 }
 0x85c   :  { %v1094_v31 = vmul.f32 %v1092_v15, %v1086_v26 }
 0x85d   :  { %v2292_v37 = vadd.f32 %v1096_v29, %v1093_v54 }
 0x85e   :  { %v2290_v32 = vadd.f32 %v1097_v28, %v1094_v31 }
 0x860   :  { %1116 = vmatprep.subr.mxu1 %v2290_v32 }
 0x861   :  { %1117 = vmatpush1.msra.mxu1 %v2292_v37 }
 0x862   :  { %1773 = vmatmul.mubr.msk.f32.vlgmr.msra.gmra.mrb[26].mxu1 %vm361_vm5, %v2113_v10 }
 0x863   :  { %1186 = vmatprep.mubr.f32.mxu1 %v1945_v3 }
 0x866   :  { %1774 = vmatmul.mubr.msk.f32.gmra.mrb[32].mxu1 %vm361_vm5, %v2123_v11 }
 0x867   :  { %1192 = vmatprep.mubr.f32.mxu1 %v1945_v3 }
 0x86a   :  { %1775 = vmatmul.mubr.msk.f32.gmra.mrb[34].mxu1 %vm361_vm5, %v2133_v12 }
 0x86b   :  { %1198 = vmatprep.mubr.f32.mxu1 %v1945_v3 }
 0x86e   :  { %1776 = vmatmul.mubr.msk.f32.gmra.mrb[36].mxu1 %vm361_vm5, %v2141_v13 }
 0x86f   :  { %1358 = vmatprep.mubr.bf16.mxu1 %v1947_v36 }
 0x935   :  { %v1182_v60 = vpop.f32.mrb[26].mxu1 }
 0x936   :  { %v1183_v10 = vadd.f32 %v1182_v60, %v2146_v17  ;;  %v1184_v39 = vpop.f32.mrb[27].mxu1 }
 0x937   :  { %v1185_v41 = vadd.f32 %v1184_v39, %v2146_v17 }
 0x938   :  { %v1777_v38 = vmul.f32 -1.442695, %v1183_v10 }
 0x939   :  { %v1778_v11 = vmul.f32 -1.442695, %v1185_v41  ;;  %v1188_v42 = vpop.f32.mrb[32].mxu1 }
 0x93a   :  { %1890 = vpow2.f32 %v1777_v38  ;;  %v1189_v44 = vadd.f32 %v1188_v42, %v2148_v18  ;;  %v1190_v12 = vpop.f32.mrb[33].mxu1 }
 0x93b   :  { %1892 = vpow2.f32 %v1778_v11  ;;  %v1191_v45 = vadd.f32 %v1190_v12, %v2148_v18 }
 0x93c   :  { %v1779_v46 = vmul.f32 -1.442695, %v1189_v44 }
 0x93d   :  { %v1780_v13 = vmul.f32 -1.442695, %v1191_v45  ;;  %v1194_v47 = vpop.f32.mrb[34].mxu1 }
 0x93e   :  { %1894 = vpow2.f32 %v1779_v46  ;;  %v1195_v48 = vadd.f32 %v1194_v47, %v2150_v19  ;;  %v1196_v49 = vpop.f32.mrb[35].mxu1 }
 0x93f   :  { %1896 = vpow2.f32 %v1780_v13  ;;  %v1197_v17 = vadd.f32 %v1196_v49, %v2150_v19 }
 0x940   :  { %v1781_v50 = vmul.f32 -1.442695, %v1195_v48 }
 0x941   :  { %v1782_v51 = vmul.f32 -1.442695, %v1197_v17  ;;  %v1200_v53 = vpop.f32.mrb[36].mxu1 }
 0x942   :  { %v1201_v55 = vadd.f32 %v1200_v53, %v2152_v20  ;;  %v1202_v57 = vpop.f32.mrb[37].mxu1 }
 0x943   :  { %1898 = vpow2.f32 %v1782_v51  ;;  %v1203_v24 = vadd.f32 %v1202_v57, %v2152_v20 }
 0x944   :  { %v1891_v18 = vpop.eup %1890  ;;  %1900 = vpow2.f32 %v1781_v50  ;;  %v1783_v21 = vmul.f32 -1.442695, %v1201_v55 }
 0x945   :  { %v1893_v58 = vpop.eup %1892  ;;  %v1229_v22 = vadd.f32 1.0, %v1891_v18  ;;  %v1784_v23 = vmul.f32 -1.442695, %v1203_v24 }
 0x946   :  { %v1230_v34 = vadd.f32 1.0, %v1893_v58  ;;  %1902 = vpow2.f32 %v1783_v21 }
 0x947   :  { %1904 = vrcp.f32 %v1229_v22 }
 0x948   :  { %v1895_v27 = vpop.eup %1894  ;;  %1906 = vpow2.f32 %v1784_v23 }
 0x949   :  { %v1897_v19 = vpop.eup %1896  ;;  %v1231_v33 = vadd.f32 1.0, %v1895_v27  ;;  %1908 = vrcp.f32 %v1230_v34 }
 0x94a   :  { %v1232_v25 = vadd.f32 1.0, %v1897_v19 }
 0x94b   :  { %1910 = vrcp.f32 %v1231_v33 }
 0x94c   :  { %1912 = vrcp.f32 %v1232_v25 }
 0x94d   :  { %v1899_v61 = vpop.eup %1898 }
 0x94e   :  { %v1901_v62 = vpop.eup %1900  ;;  %v1234_v63 = vadd.f32 1.0, %v1899_v61 }
 0x94f   :  { %v1233_v0 = vadd.f32 1.0, %v1901_v62 }
 0x950   :  { %v1903_v20 = vpop.eup %1902 }
 0x951   :  { %v1235_v1 = vadd.f32 1.0, %v1903_v20  ;;  %v1905_v4 = vpop.eup %1904 }
 0x952   :  { %v1907_v5 = vpop.eup %1906  ;;  %v2322_v28 = vmul.f32 %v1905_v4, %v1183_v10 }
 0x953   :  { %1914 = vrcp.f32 %v1235_v1  ;;  %v1909_v6 = vpop.eup %1908  ;;  %v1236_v7 = vadd.f32 1.0, %v1907_v5 }
 0x954   :  { %1916 = vrcp.f32 %v1234_v63  ;;  %v2318_v16 = vmul.f32 %v1909_v6, %v1185_v41 }
 0x955   :  { %v1911_v14 = vpop.eup %1910  ;;  %1918 = vrcp.f32 %v1233_v0 }
 0x956   :  { %v1913_v15 = vpop.eup %1912  ;;  %v2316_v52 = vmul.f32 %v1911_v14, %v1189_v44  ;;  %1920 = vrcp.f32 %v1236_v7 }
 0x957   :  { %v2320_v26 = vmul.f32 %v1913_v15, %v1191_v45 }
 0x958   :  { %v1261_v29 = vpack.c.bf16 %v2316_v52, %v2322_v28 }
 0x959   :  { %v1262_v54 = vpack.c.bf16 %v2320_v26, %v2318_v16 }
 0x95b   :  { %1265 = vmatprep.subr.bf16.mxu0 %v1262_v54 }
 0x95c   :  { %1266 = vmatpush1.bf16.msra.mxu0 %v1261_v29 }
 0x95d   :  { %v1915_v31 = vpop.eup %1914 }
 0x95e   :  { %v1917_v60 = vpop.eup %1916  ;;  %v2328_v11 = vmul.f32 %v1915_v31, %v1201_v55 }
 0x95f   :  { %v1919_v39 = vpop.eup %1918  ;;  %v2330_v41 = vmul.f32 %v1917_v60, %v1197_v17 }
 0x960   :  { %v1921_v38 = vpop.eup %1920  ;;  %v2334_v10 = vmul.f32 %v1919_v39, %v1195_v48 }
 0x961   :  { %v2332_v42 = vmul.f32 %v1921_v38, %v1203_v24 }
 0x962   :  { %v1263_v12 = vpack.c.bf16 %v2328_v11, %v2334_v10 }
 0x963   :  { %v1264_v44 = vpack.c.bf16 %v2332_v42, %v2330_v41 }
 0x965   :  { %1267 = vmatprep.subr.bf16.mxu0 %v1264_v44 }
 0x966   :  { %1268 = vmatpush1.bf16.msra.mxu0 %v1263_v12 }
 0x969   :  { %1785 = vmatmul.mubr.msk.bf16.vlgmr.msra.gmra.mrb[28].mxu0 %vm76_vm1, %v2191_v40 }
 0x96a   :  { %1307 = vmatprep.mubr.bf16.mxu0 %v1947_v36 }
 0x971   :  { %1786 = vmatmul.mubr.msk.bf16.gmra.mrb[32].mxu0 %vm76_vm1, %v2202_v43  ;;  %v1318_v43 = vpack.c.bf16 %v2094_v56, %v2094_v56 }
 0x972   :  { %1513 = vmatprep.mubr.f32.mxu0 %v1945_v3 }
 0xa3c   :  { %v1299_v45 = vpop.f32.mrb[28].mxu0 }
 0xa3d   :  { %v1301_v46 = vpop.f32.mrb[29].mxu0 }
 0xa3e   :  { %v1303_v13 = vpop.f32.mrb[30].mxu0 }
 0xa3f   :  { %v1319_v47 = vpack.c.bf16 %v1303_v13, %v1299_v45  ;;  %v1305_v48 = vpop.f32.mrb[31].mxu0 }
 0xa40   :  { %v1320_v49 = vpack.c.bf16 %v1305_v48, %v1301_v46  ;;  %v1421_v46 = vpop.trf.xlu1 }
 0xa42   :  { %1326 = vmatprep.subr.bf16.mxu1 %v1320_v49 }
 0xa43   :  { %1327 = vmatpush1.bf16.msra.mxu1 %v1319_v47 }
 0xa44   :  { %v1309_v17 = vpop.f32.mrb[32].mxu0 }
 0xa45   :  { %v1311_v50 = vpop.f32.mrb[33].mxu0 }
 0xa46   :  { %v1313_v51 = vpop.f32.mrb[34].mxu0 }
 0xa47   :  { %v1321_v53 = vpack.c.bf16 %v1313_v51, %v1309_v17  ;;  %v1315_v40 = vpop.f32.mrb[35].mxu0  ;;  %v1422_v17 = vpop.trf.xlu1 }
 0xa48   :  { %v1322_v55 = vpack.c.bf16 %v1315_v40, %v1311_v50 }
 0xa4a   :  { %1328 = vmatprep.subr.bf16.mxu1 %v1322_v55 }
 0xa4b   :  { %1329 = vmatpush1.bf16.msra.mxu1 %v1321_v53  ;;  %v1423_v50 = vpop.trf.xlu1 }
 0xa4e   :  { %1787 = vmatmul.mubr.msk.bf16.vlgmr.msra.gmra.mrb[40].mxu1 %vm76_vm1, %v1318_v43 }
 0xa4f   :  { %1574 = vmatprep.mubr.bf16.mxu1 %v1947_v36  ;;  %v1424_v51 = vpop.trf.xlu1 }
 0xb21   :  { %v1360_v57 = vpop.f32.mrb[40].mxu1 }
 0xb22   :  { %v1367_v24 = vrot.slane %v1360_v57, 4  ;;  %v1362_v18 = vpop.f32.mrb[41].mxu1 }
 0xb23   :  { %v1373_v21 = vrot.slane %v1362_v18, 4  ;;  %v1364_v58 = vpop.f32.mrb[42].mxu1 }
 0xb24   :  { %v1368_v22 = vmax.f32 %v1360_v57, %v1367_v24  ;;  %v1365_v23 = vpop.f32.mrb[43].mxu1 }
 0xb25   :  { %v1374_v34 = vmax.f32 %v1362_v18, %v1373_v21 }
 0xb26   :  { %v1369_v27 = vrot.slane %v1368_v22, 2 }
 0xb27   :  { %v1375_v19 = vrot.slane %v1374_v34, 2 }
 0xb28   :  { %v1370_v33 = vmax.f32 %v1368_v22, %v1369_v27 }
 0xb29   :  { %v1376_v25 = vmax.f32 %v1374_v34, %v1375_v19 }
 0xb2a   :  { %v1371_v61 = vrot.slane %v1370_v33, 1 }
 0xb2b   :  { %v1377_v62 = vrot.slane %v1376_v25, 1 }
 0xb2c   :  { %v1372_v20 = vmax.f32 %v1370_v33, %v1371_v61 }
 0xb2d   :  { %v1378_v56 = vmax.f32 %v1376_v25, %v1377_v62 }
 0xb2e   :  { %v1379_v63 = vsub.f32 %v1360_v57, %v1372_v20 }
 0xb2f   :  { %v1380_v0 = vsub.f32 %v1362_v18, %v1378_v56 }
 0xb30   :  { %v1381_v1 = vmul.f32 1.442695, %v1379_v63 }
 0xb31   :  { %v1383_v4 = vmul.f32 1.442695, %v1380_v0 }
 0xb32   :  { %1922 = vpow2.f32 %v1381_v1 }
 0xb33   :  { %1924 = vpow2.f32 %v1383_v4 }
 0xb3c   :  { %v1923_v5 = vpop.eup %1922 }
 0xb3d   :  { %v1925_v6 = vpop.eup %1924  ;;  %v1385_v7 = vrot.slane %v1923_v5, 4 }
 0xb3e   :  { %v1391_v14 = vrot.slane %v1925_v6, 4 }
 0xb3f   :  { %v1386_v15 = vadd.f32 %v1923_v5, %v1385_v7 }
 0xb40   :  { %v1392_v54 = vadd.f32 %v1925_v6, %v1391_v14 }
 0xb41   :  { %v1387_v29 = vrot.slane %v1386_v15, 2 }
 0xb42   :  { %v1393_v31 = vrot.slane %v1392_v54, 2 }
 0xb43   :  { %v1388_v60 = vadd.f32 %v1387_v29, %v1386_v15 }
 0xb44   :  { %v1394_v39 = vadd.f32 %v1393_v31, %v1392_v54 }
 0xb45   :  { %v1389_v38 = vrot.slane %v1388_v60, 1 }
 0xb46   :  { %v1395_v44 = vrot.slane %v1394_v39, 1 }
 0xb47   :  { %v1390_v12 = vadd.f32 %v1389_v38, %v1388_v60 }
 0xb48   :  { %v1396_v45 = vadd.f32 %v1395_v44, %v1394_v39 }
 0xb49   :  { %1926 = vrcp.f32 %v1390_v12 }
 0xb4a   :  { %1928 = vrcp.f32 %v1396_v45 }
 0xb53   :  { %v1927_v13 = vpop.eup %1926 }
 0xb54   :  { %v1929_v47 = vpop.eup %1928  ;;  %v1399_v49 = vmul.f32 %v1927_v13, %v1923_v5 }
 0xb55   :  { %v1400_v48 = vmul.f32 %v1929_v47, %v1925_v6 }
 0xb57   :  { %1449 = vmatprep.subr.mxu0 %v1400_v48 }
 0xb58   :  { %1450 = vmatpush1.msra.mxu0 %v1399_v49 }
 0xb59   :  { %1788 = vmatmul.mubr.msk.f32.vlgmr.msra.gmra.mrb[36].mxu0 %vm361_vm5, %v1421_v46 }
 0xb5a   :  { %1519 = vmatprep.mubr.f32.mxu0 %v1945_v3 }
 0xb5d   :  { %1789 = vmatmul.mubr.msk.f32.gmra.mrb[38].mxu0 %vm361_vm5, %v1422_v17 }
 0xb5e   :  { %1525 = vmatprep.mubr.f32.mxu0 %v1945_v3 }
 0xb61   :  { %1790 = vmatmul.mubr.msk.f32.gmra.mrb[40].mxu0 %vm361_vm5, %v1423_v50 }
 0xb62   :  { %1531 = vmatprep.mubr.f32.mxu0 %v1945_v3 }
 0xb65   :  { %1791 = vmatmul.mubr.msk.f32.gmra.mrb[42].mxu0 %vm361_vm5, %v1424_v51 }
 0xb66   :  { %1639 = vmatprep.mubr.bf16.mxu0 %v1947_v36 }
 0xc2c   :  { %v1515_v53 = vpop.f32.mrb[36].mxu0 }
 0xc2d   :  { %v1517_v40 = vpop.f32.mrb[37].mxu0 }
 0xc30   :  { %v1521_v55 = vpop.f32.mrb[38].mxu0 }
 0xc31   :  { %v1538_v43 = vpack.c.bf16 %v1521_v55, %v1515_v53  ;;  %v1523_v57 = vpop.f32.mrb[39].mxu0 }
 0xc32   :  { %v1539_v24 = vpack.c.bf16 %v1523_v57, %v1517_v40 }
 0xc34   :  { %v1527_v18 = vpop.f32.mrb[40].mxu0  ;;  %1542 = vmatprep.subr.bf16.mxu1 %v1539_v24 }
 0xc35   :  { %v1529_v21 = vpop.f32.mrb[41].mxu0  ;;  %1543 = vmatpush1.bf16.msra.mxu1 %v1538_v43 }
 0xc38   :  { %v1533_v58 = vpop.f32.mrb[42].mxu0 }
 0xc39   :  { %v1540_v22 = vpack.c.bf16 %v1533_v58, %v1527_v18  ;;  %v1535_v23 = vpop.f32.mrb[43].mxu0 }
 0xc3a   :  { %v1541_v34 = vpack.c.bf16 %v1535_v23, %v1529_v21 }
 0xc3c   :  { %1544 = vmatprep.subr.bf16.mxu1 %v1541_v34 }
 0xc3d   :  { %1545 = vmatpush1.bf16.msra.mxu1 %v1540_v22 }
 0xc40   :  { %1792 = vmatmul.mubr.msk.bf16.vlgmr.msra.gmra.mrb[44].mxu1 %vm76_vm1, %v2225_v30 }
 0xc41   :  { %1584 = vmatprep.mubr.bf16.mxu1 %v1947_v36 }
 0xc48   :  { %1793 = vmatmul.mubr.msk.bf16.gmra.mrb[48].mxu1 %vm76_vm1, %v2236_v35 }
 0xc49   :  { %1714 = vmatprep.mubr.f32.mxu1 %v1945_v3 }
 0xd13   :  { %v1576_v27 = vpop.f32.mrb[44].mxu1 }
 0xd14   :  { %v1578_v19 = vpop.f32.mrb[45].mxu1  ;;  %v1595_v25 = vadd.f32 %v1576_v27, %v2322_v28 }
 0xd15   :  { %v1580_v33 = vpop.f32.mrb[46].mxu1  ;;  %v1596_v20 = vadd.f32 %v1578_v19, %v2318_v16 }
 0xd16   :  { %v1597_v61 = vadd.f32 %v1580_v33, %v2316_v52  ;;  %v1582_v62 = vpop.f32.mrb[47].mxu1 }
 0xd17   :  { %v1598_v56 = vadd.f32 %v1582_v62, %v2320_v26 }
 0xd18   :  { %v1603_v30 = vpack.c.bf16 %v1597_v61, %v1595_v25 }
 0xd19   :  { %v1604_v63 = vpack.c.bf16 %v1598_v56, %v1596_v20 }
 0xd1b   :  { %v1586_v36 = vpop.f32.mrb[48].mxu1  ;;  %1607 = vmatprep.subr.bf16.mxu0 %v1604_v63 }
 0xd1c   :  { %v1588_v0 = vpop.f32.mrb[49].mxu1  ;;  %1608 = vmatpush1.bf16.msra.mxu0 %v1603_v30  ;;  %v1599_v3 = vadd.f32 %v1586_v36, %v2334_v10 }
 0xd1d   :  { %v1590_v35 = vpop.f32.mrb[50].mxu1  ;;  %v1600_v28 = vadd.f32 %v1588_v0, %v2330_v41  ;;  %v931_v41 = vpop.permute.xlu0 %930 }
 0xd1e   :  { %v1601_v1 = vadd.f32 %v1590_v35, %v2328_v11  ;;  %v1592_v4 = vpop.f32.mrb[51].mxu1  ;;  %v1005_v60 = vadd.f32 %v2280_v9, %v931_v41 }
 0xd1f   :  { %v1602_v52 = vadd.f32 %v1592_v4, %v2332_v42 }
 0xd20   :  { %v1605_v5 = vpack.c.bf16 %v1601_v1, %v1599_v3 }
 0xd21   :  { %v1606_v16 = vpack.c.bf16 %v1602_v52, %v1600_v28 }
 0xd23   :  { %1609 = vmatprep.subr.bf16.mxu0 %v1606_v16 }
 0xd24   :  { %1610 = vmatpush1.bf16.msra.mxu0 %v1605_v5 }
 0xd27   :  { %1794 = vmatmul.mubr.msk.bf16.vlgmr.msra.gmra.mrb[44].mxu0 %vm76_vm1, %v2252_v59  ;;  %v1003_v59 = vadd.f32 %v2278_v8, %v931_v41 }
 0xdfa   :  { %v1641_v26 = vpop.f32.mrb[44].mxu0 }
 0xdfb   :  { %v1643_v6 = vpop.f32.mrb[45].mxu0  ;;  %v1648_v10 = vadd.f32 %v1641_v26, %v2292_v37 }
 0xdfc   :  { %v1649_v7 = vadd.f32 %v1643_v6, %v2290_v32  ;;  %v1645_v14 = vpop.f32.mrb[46].mxu0 }
 0xdfd   :  { %v1646_v11 = vpop.f32.mrb[47].mxu0 }
 0xdfe   :  { %1650 = vmatprep.subr.mxu1 %v1649_v7 }
 0xdff   :  { %1651 = vmatpush1.msra.mxu1 %v1648_v10 }
 0xe00   :  { %1795 = vmatmul.mubr.msk.f32.vlgmr.msra.gmra.mrb[38].mxu1 %vm361_vm5, %v2268_v2 }
 0xed3   :  { %v1716_v42 = vpop.f32.mrb[38].mxu1 }
 0xed4   :  { %v1717_v15 = vadd.f32 %v1716_v42, %v931_v41  ;;  %v1718_v54 = vpop.f32.mrb[39].mxu1 }
 0xed5   :  { %v1719_v29 = vadd.f32 %v1718_v54, %v931_v41 }
 0xed6   :  { %v1723_v31 = vrot.slane %v1717_v15, 4 }
 0xed7   :  { %v1724_v32 = vrot.slane %v1719_v29, 4 }
 0xed8   :  { %v1727_v39 = vsel %vm251_vm3, %v1003_v59, %v1723_v31 }
 0xed9   :  { %1729 = vst [vmem:[%s2394_s6] sm:$0xff] %v1727_v39  ;;  %v1728_v37 = vsel %vm251_vm3, %v1005_v60, %v1724_v32 }
 0xeda   :  { %1730 = vst [vmem:[%s2394_s6 + $0x8] sm:$0xff] %v1728_v37 }
 0xedb   :  { %1735 = vsyncpa [#allocation3], 1 }

</bundles_post_ra>
